<compile_context>
chip_gen: v7x
topology: tpu7x:2x2x1
jax: 0.10.0
libtpu: 0.0.40
codegen_flags: <defaults>
</compile_context>

<pallas_src>
import jax
import jax.numpy as jnp
from jax.experimental import pallas as pl
from jax.experimental.pallas import tpu as pltpu


LANES = 128

# Offsets into the packed parameter vector (row-major PyTorch weight order).
_W1, _B1 = 0, 2            # fc1: w (2, 1),  b (2,)
_W2, _B2 = 4, 8            # fc2: w (2, 2),  b (2,)
_W3, _B3 = 10, 42          # fc3: w (16, 2), b (16,)
_W4, _B4 = 58, 74          # fc4: w (1, 16), b (1,)
_NPARAMS = 75

# Candidate in-kernel strip heights (rows per compute chunk). 32 rows x 128
# lanes f32 = 4 vregs per live array -> whole fc1..fc4 chain fits in ~30 vregs.
_STRIPS = (32, 16, 8)


def _cdiv(a, b):
    return -(-a // b)


def _round_up(a, m):
    return _cdiv(a, m) * m


def _chain(theta_ref, x):
    """fc1->ReLU->fc2->ReLU->fc3->ReLU->fc4 on one lane-dense (rows,128) strip."""
    relu = lambda v: jnp.maximum(v, 0.0)

    # fc1: 1 -> 2  (2 scalar-splat mul/adds per batch vreg)
    h1_0 = relu(theta_ref[_W1 + 0] * x + theta_ref[_B1 + 0])
    h1_1 = relu(theta_ref[_W1 + 1] * x + theta_ref[_B1 + 1])

    # fc2: 2 -> 2
    h2_0 = relu(theta_ref[_W2 + 0] * h1_0 + theta_ref[_W2 + 1] * h1_1
                + theta_ref[_B2 + 0])
    h2_1 = relu(theta_ref[_W2 + 2] * h1_0 + theta_ref[_W2 + 3] * h1_1
                + theta_ref[_B2 + 1])

    # fc3: 2 -> 16 (ReLU) fused with fc4: 16 -> 1.
    # 4 partial accumulators (groups of 4 j's) -> shallow add tree (hides VALU
    # add latency; no f32 FMA on v5e/v6e) and only a handful of live splats.
    # b4 is folded into group 0 (avoids a full-tile zero/broadcast init).
    parts = []
    for g in range(4):
        p = None
        for j in range(4 * g, 4 * g + 4):
            h3 = relu(theta_ref[_W3 + 2 * j] * h2_0
                      + theta_ref[_W3 + 2 * j + 1] * h2_1
                      + theta_ref[_B3 + j])
            term = theta_ref[_W4 + j] * h3
            if p is None:
                p = (term + theta_ref[_B4]) if g == 0 else term
            else:
                p = p + term
        parts.append(p)
    return (parts[0] + parts[1]) + (parts[2] + parts[3])


def _biquad_kernel(theta_ref, x_ref, o_ref):
    # theta_ref: (75,) f32 in SMEM (scalar-prefetched packed weights/biases).
    # x_ref / o_ref: (tr, 128) f32 lane-dense batch tiles in VMEM.
    tr = x_ref.shape[0]

    # Pick the largest strip height that strictly subdivides the block; this
    # decouples the (large) DMA tile from the (small) compute working set.
    strip = next((s for s in _STRIPS if tr > s and tr % s == 0), 0)

    if strip == 0:
        # Small block (<= 32 rows, or a single whole-array tile): one shot.
        o_ref[...] = _chain(theta_ref, x_ref[...])
    else:
        n_strips = tr // strip

        def body(s, carry):
            r0 = pl.multiple_of(s * strip, strip)
            xs = x_ref[pl.ds(r0, strip), :]
            o_ref[pl.ds(r0, strip), :] = _chain(theta_ref, xs)
            return carry

        jax.lax.fori_loop(0, n_strips, body, 0, unroll=2)


def _pack_params(params):
    """Flatten all weights/biases (PyTorch layout) into one f32 vector."""
    theta = jnp.concatenate([
        params["w1"].reshape(-1), params["b1"].reshape(-1),
        params["w2"].reshape(-1), params["b2"].reshape(-1),
        params["w3"].reshape(-1), params["b3"].reshape(-1),
        params["w4"].reshape(-1), params["b4"].reshape(-1),
    ]).astype(jnp.float32)
    assert theta.shape[0] == _NPARAMS
    return theta


def biquad_forward(x, params, *, rows_per_tile=2048):
    """x: (B, 1) float32.  params: dict of (w, b) per layer in PyTorch layout
    (w: (out, in), b: (out,)).  Returns (B, 1) float32."""
    B = x.shape[0]
    assert rows_per_tile % 8 == 0 and rows_per_tile >= 8
    # NOTE: at rows_per_tile=2048 the in+out double-buffered blocks are 4 MiB,
    # well inside the default scoped VMEM limit even on v7x (64 MiB physical).

    r_needed = max(1, _cdiv(B, LANES))             # rows of 128 lanes needed

    if r_needed > rows_per_tile:
        tr = rows_per_tile
    elif r_needed >= 16:
        # Force >= 2 grid steps so dimension_semantics=("parallel",) can spread
        # work across both v7x TensorCores (no effect on 1-TC v5e/v6e).
        tr = min(rows_per_tile, _round_up(_cdiv(r_needed, 2), 8))
    else:
        tr = r_needed                              # single tile == full array
    R = _round_up(r_needed, tr)

    # Lane-dense relayout: batch along lanes, 128 elements per row.
    pad = R * LANES - B
    xf = x.astype(jnp.float32).reshape(-1)
    if pad:
        # Ragged tail only: pad-free batches (B % 128 == 0 fitting the tile
        # grid) skip this extra HBM round-trip and the final slice entirely.
        xf = jnp.pad(xf, (0, pad))
    x2 = xf.reshape(R, LANES)

    theta = _pack_params(params)

    out2 = pl.pallas_call(
        _biquad_kernel,
        out_shape=jax.ShapeDtypeStruct((R, LANES), jnp.float32),
        grid_spec=pltpu.PrefetchScalarGridSpec(
            num_scalar_prefetch=1,                 # theta lands in SMEM
            grid=(R // tr,),
            in_specs=[
                pl.BlockSpec((tr, LANES), lambda i, theta: (i, 0)),  # x slab
            ],
            out_specs=pl.BlockSpec((tr, LANES), lambda i, theta: (i, 0)),
        ),
        compiler_params=pltpu.CompilerParams(
            dimension_semantics=("parallel",),
        ),
    )(theta, x2)

    # Undo the lane-dense relayout / padding.
    out_flat = out2.reshape(-1)
    if pad:
        out_flat = out_flat[:B]
    return out_flat.reshape(B, 1)


def init_params(key):
    """Deterministic init matching PyTorch Linear shapes:
    fc1: (2,1)/(2,), fc2: (2,2)/(2,), fc3: (16,2)/(16,), fc4: (1,16)/(1,)."""
    dims = [(1, 2), (2, 2), (2, 16), (16, 1)]
    params = {}
    keys = jax.random.split(key, 2 * len(dims))
    for idx, (fan_in, fan_out) in enumerate(dims):
        bound = 1.0 / (fan_in ** 0.5)
        w = jax.random.uniform(keys[2 * idx], (fan_out, fan_in),
                               minval=-bound, maxval=bound, dtype=jnp.float32)
        b = jax.random.uniform(keys[2 * idx + 1], (fan_out,),
                               minval=-bound, maxval=bound, dtype=jnp.float32)
        params[f"w{idx + 1}"] = w
        params[f"b{idx + 1}"] = b
    return params


def reference_forward(x, p):
    h = jnp.maximum(x @ p["w1"].T + p["b1"], 0.0)
    h = jnp.maximum(h @ p["w2"].T + p["b2"], 0.0)
    h = jnp.maximum(h @ p["w3"].T + p["b3"], 0.0)
    return h @ p["w4"].T + p["b4"]


if __name__ == "__main__":
    key = jax.random.PRNGKey(0)
    k_x1, k_x2, k_x3, k_p = jax.random.split(key, 4)

    params = init_params(k_p)

    # 1) Small batch (B=8): single whole-array tile, no padding math surprises.
    B1 = 8
    x1 = jax.random.normal(k_x1, (B1, 1), dtype=jnp.float32)
    out1 = jax.block_until_ready(biquad_forward(x1, params))
    ref1 = reference_forward(x1, params)
    assert out1.shape == (B1, 1)
    assert jnp.allclose(out1, ref1, atol=1e-5, rtol=1e-5)

    # 2) Pad-free batch (B=2048): >=2 grid steps (v7x dual-TC path), no pad op.
    B2 = 2048
    x2 = jax.random.normal(k_x2, (B2, 1), dtype=jnp.float32)
    out2 = jax.block_until_ready(biquad_forward(x2, params))
    ref2 = reference_forward(x2, params)
    assert out2.shape == (B2, 1)
    assert jnp.allclose(out2, ref2, atol=1e-5, rtol=1e-5)

    # 3) Ragged batch with multi-step grid and the in-kernel 32-row strip loop.
    B3 = 10000
    x3 = jax.random.normal(k_x3, (B3, 1), dtype=jnp.float32)
    out3 = jax.block_until_ready(biquad_forward(x3, params, rows_per_tile=64))
    ref3 = reference_forward(x3, params)
    assert out3.shape == (B3, 1)
    assert jnp.allclose(out3, ref3, atol=1e-5, rtol=1e-5)

    print("KERNEL_OK")
</pallas_src>

<mosaic_0001>
module attributes {stable_mosaic.version = 11 : i64} {
  func.func @_biquad_kernel(%arg0: i32, %arg1: memref<75xf32, #tpu.memory_space<smem>>, %arg2: memref<1x128xf32, #tpu.memory_space<vmem>>, %arg3: memref<1x128xf32, #tpu.memory_space<vmem>>) attributes {dimension_semantics = [#tpu.dimension_semantics<parallel>], iteration_bounds = array<i64: 1>, scalar_prefetch = 1 : i64, scratch_operands = 0 : i64, tpu.core_type = #tpu.core_type<tc>, window_params = [{transform_indices = @transform_0, window_bounds = array<i64: 1, 128>}, {transform_indices = @transform_1, window_bounds = array<i64: 1, 128>}]} {
    %c0 = arith.constant 0 : index
    %c0_0 = arith.constant 0 : index
    %0 = vector.load %arg2[%c0, %c0_0] : memref<1x128xf32, #tpu.memory_space<vmem>>, vector<1x128xf32>
    %c0_1 = arith.constant 0 : index
    %1 = memref.load %arg1[%c0_1] : memref<75xf32, #tpu.memory_space<smem>>
    %2 = vector.broadcast %1 : f32 to vector<1x128xf32>
    %3 = arith.mulf %2, %0 : vector<1x128xf32>
    %c2 = arith.constant 2 : index
    %4 = memref.load %arg1[%c2] : memref<75xf32, #tpu.memory_space<smem>>
    %5 = vector.broadcast %4 : f32 to vector<1x128xf32>
    %6 = arith.addf %3, %5 : vector<1x128xf32>
    %cst = arith.constant 0.000000e+00 : f32
    %7 = vector.broadcast %cst : f32 to vector<1x128xf32>
    %8 = arith.maximumf %6, %7 : vector<1x128xf32>
    %c1 = arith.constant 1 : index
    %9 = memref.load %arg1[%c1] : memref<75xf32, #tpu.memory_space<smem>>
    %10 = vector.broadcast %9 : f32 to vector<1x128xf32>
    %11 = arith.mulf %10, %0 : vector<1x128xf32>
    %c3 = arith.constant 3 : index
    %12 = memref.load %arg1[%c3] : memref<75xf32, #tpu.memory_space<smem>>
    %13 = vector.broadcast %12 : f32 to vector<1x128xf32>
    %14 = arith.addf %11, %13 : vector<1x128xf32>
    %cst_2 = arith.constant 0.000000e+00 : f32
    %15 = vector.broadcast %cst_2 : f32 to vector<1x128xf32>
    %16 = arith.maximumf %14, %15 : vector<1x128xf32>
    %c4 = arith.constant 4 : index
    %17 = memref.load %arg1[%c4] : memref<75xf32, #tpu.memory_space<smem>>
    %18 = vector.broadcast %17 : f32 to vector<1x128xf32>
    %19 = arith.mulf %18, %8 : vector<1x128xf32>
    %c5 = arith.constant 5 : index
    %20 = memref.load %arg1[%c5] : memref<75xf32, #tpu.memory_space<smem>>
    %21 = vector.broadcast %20 : f32 to vector<1x128xf32>
    %22 = arith.mulf %21, %16 : vector<1x128xf32>
    %23 = arith.addf %19, %22 : vector<1x128xf32>
    %c8 = arith.constant 8 : index
    %24 = memref.load %arg1[%c8] : memref<75xf32, #tpu.memory_space<smem>>
    %25 = vector.broadcast %24 : f32 to vector<1x128xf32>
    %26 = arith.addf %23, %25 : vector<1x128xf32>
    %cst_3 = arith.constant 0.000000e+00 : f32
    %27 = vector.broadcast %cst_3 : f32 to vector<1x128xf32>
    %28 = arith.maximumf %26, %27 : vector<1x128xf32>
    %c6 = arith.constant 6 : index
    %29 = memref.load %arg1[%c6] : memref<75xf32, #tpu.memory_space<smem>>
    %30 = vector.broadcast %29 : f32 to vector<1x128xf32>
    %31 = arith.mulf %30, %8 : vector<1x128xf32>
    %c7 = arith.constant 7 : index
    %32 = memref.load %arg1[%c7] : memref<75xf32, #tpu.memory_space<smem>>
    %33 = vector.broadcast %32 : f32 to vector<1x128xf32>
    %34 = arith.mulf %33, %16 : vector<1x128xf32>
    %35 = arith.addf %31, %34 : vector<1x128xf32>
    %c9 = arith.constant 9 : index
    %36 = memref.load %arg1[%c9] : memref<75xf32, #tpu.memory_space<smem>>
    %37 = vector.broadcast %36 : f32 to vector<1x128xf32>
    %38 = arith.addf %35, %37 : vector<1x128xf32>
    %cst_4 = arith.constant 0.000000e+00 : f32
    %39 = vector.broadcast %cst_4 : f32 to vector<1x128xf32>
    %40 = arith.maximumf %38, %39 : vector<1x128xf32>
    %c10 = arith.constant 10 : index
    %41 = memref.load %arg1[%c10] : memref<75xf32, #tpu.memory_space<smem>>
    %42 = vector.broadcast %41 : f32 to vector<1x128xf32>
    %43 = arith.mulf %42, %28 : vector<1x128xf32>
    %c11 = arith.constant 11 : index
    %44 = memref.load %arg1[%c11] : memref<75xf32, #tpu.memory_space<smem>>
    %45 = vector.broadcast %44 : f32 to vector<1x128xf32>
    %46 = arith.mulf %45, %40 : vector<1x128xf32>
    %47 = arith.addf %43, %46 : vector<1x128xf32>
    %c42 = arith.constant 42 : index
    %48 = memref.load %arg1[%c42] : memref<75xf32, #tpu.memory_space<smem>>
    %49 = vector.broadcast %48 : f32 to vector<1x128xf32>
    %50 = arith.addf %47, %49 : vector<1x128xf32>
    %cst_5 = arith.constant 0.000000e+00 : f32
    %51 = vector.broadcast %cst_5 : f32 to vector<1x128xf32>
    %52 = arith.maximumf %50, %51 : vector<1x128xf32>
    %c58 = arith.constant 58 : index
    %53 = memref.load %arg1[%c58] : memref<75xf32, #tpu.memory_space<smem>>
    %54 = vector.broadcast %53 : f32 to vector<1x128xf32>
    %55 = arith.mulf %54, %52 : vector<1x128xf32>
    %c74 = arith.constant 74 : index
    %56 = memref.load %arg1[%c74] : memref<75xf32, #tpu.memory_space<smem>>
    %57 = vector.broadcast %56 : f32 to vector<1x128xf32>
    %58 = arith.addf %55, %57 : vector<1x128xf32>
    %c12 = arith.constant 12 : index
    %59 = memref.load %arg1[%c12] : memref<75xf32, #tpu.memory_space<smem>>
    %60 = vector.broadcast %59 : f32 to vector<1x128xf32>
    %61 = arith.mulf %60, %28 : vector<1x128xf32>
    %c13 = arith.constant 13 : index
    %62 = memref.load %arg1[%c13] : memref<75xf32, #tpu.memory_space<smem>>
    %63 = vector.broadcast %62 : f32 to vector<1x128xf32>
    %64 = arith.mulf %63, %40 : vector<1x128xf32>
    %65 = arith.addf %61, %64 : vector<1x128xf32>
    %c43 = arith.constant 43 : index
    %66 = memref.load %arg1[%c43] : memref<75xf32, #tpu.memory_space<smem>>
    %67 = vector.broadcast %66 : f32 to vector<1x128xf32>
    %68 = arith.addf %65, %67 : vector<1x128xf32>
    %cst_6 = arith.constant 0.000000e+00 : f32
    %69 = vector.broadcast %cst_6 : f32 to vector<1x128xf32>
    %70 = arith.maximumf %68, %69 : vector<1x128xf32>
    %c59 = arith.constant 59 : index
    %71 = memref.load %arg1[%c59] : memref<75xf32, #tpu.memory_space<smem>>
    %72 = vector.broadcast %71 : f32 to vector<1x128xf32>
    %73 = arith.mulf %72, %70 : vector<1x128xf32>
    %74 = arith.addf %58, %73 : vector<1x128xf32>
    %c14 = arith.constant 14 : index
    %75 = memref.load %arg1[%c14] : memref<75xf32, #tpu.memory_space<smem>>
    %76 = vector.broadcast %75 : f32 to vector<1x128xf32>
    %77 = arith.mulf %76, %28 : vector<1x128xf32>
    %c15 = arith.constant 15 : index
    %78 = memref.load %arg1[%c15] : memref<75xf32, #tpu.memory_space<smem>>
    %79 = vector.broadcast %78 : f32 to vector<1x128xf32>
    %80 = arith.mulf %79, %40 : vector<1x128xf32>
    %81 = arith.addf %77, %80 : vector<1x128xf32>
    %c44 = arith.constant 44 : index
    %82 = memref.load %arg1[%c44] : memref<75xf32, #tpu.memory_space<smem>>
    %83 = vector.broadcast %82 : f32 to vector<1x128xf32>
    %84 = arith.addf %81, %83 : vector<1x128xf32>
    %cst_7 = arith.constant 0.000000e+00 : f32
    %85 = vector.broadcast %cst_7 : f32 to vector<1x128xf32>
    %86 = arith.maximumf %84, %85 : vector<1x128xf32>
    %c60 = arith.constant 60 : index
    %87 = memref.load %arg1[%c60] : memref<75xf32, #tpu.memory_space<smem>>
    %88 = vector.broadcast %87 : f32 to vector<1x128xf32>
    %89 = arith.mulf %88, %86 : vector<1x128xf32>
    %90 = arith.addf %74, %89 : vector<1x128xf32>
    %c16 = arith.constant 16 : index
    %91 = memref.load %arg1[%c16] : memref<75xf32, #tpu.memory_space<smem>>
    %92 = vector.broadcast %91 : f32 to vector<1x128xf32>
    %93 = arith.mulf %92, %28 : vector<1x128xf32>
    %c17 = arith.constant 17 : index
    %94 = memref.load %arg1[%c17] : memref<75xf32, #tpu.memory_space<smem>>
    %95 = vector.broadcast %94 : f32 to vector<1x128xf32>
    %96 = arith.mulf %95, %40 : vector<1x128xf32>
    %97 = arith.addf %93, %96 : vector<1x128xf32>
    %c45 = arith.constant 45 : index
    %98 = memref.load %arg1[%c45] : memref<75xf32, #tpu.memory_space<smem>>
    %99 = vector.broadcast %98 : f32 to vector<1x128xf32>
    %100 = arith.addf %97, %99 : vector<1x128xf32>
    %cst_8 = arith.constant 0.000000e+00 : f32
    %101 = vector.broadcast %cst_8 : f32 to vector<1x128xf32>
    %102 = arith.maximumf %100, %101 : vector<1x128xf32>
    %c61 = arith.constant 61 : index
    %103 = memref.load %arg1[%c61] : memref<75xf32, #tpu.memory_space<smem>>
    %104 = vector.broadcast %103 : f32 to vector<1x128xf32>
    %105 = arith.mulf %104, %102 : vector<1x128xf32>
    %106 = arith.addf %90, %105 : vector<1x128xf32>
    %c18 = arith.constant 18 : index
    %107 = memref.load %arg1[%c18] : memref<75xf32, #tpu.memory_space<smem>>
    %108 = vector.broadcast %107 : f32 to vector<1x128xf32>
    %109 = arith.mulf %108, %28 : vector<1x128xf32>
    %c19 = arith.constant 19 : index
    %110 = memref.load %arg1[%c19] : memref<75xf32, #tpu.memory_space<smem>>
    %111 = vector.broadcast %110 : f32 to vector<1x128xf32>
    %112 = arith.mulf %111, %40 : vector<1x128xf32>
    %113 = arith.addf %109, %112 : vector<1x128xf32>
    %c46 = arith.constant 46 : index
    %114 = memref.load %arg1[%c46] : memref<75xf32, #tpu.memory_space<smem>>
    %115 = vector.broadcast %114 : f32 to vector<1x128xf32>
    %116 = arith.addf %113, %115 : vector<1x128xf32>
    %cst_9 = arith.constant 0.000000e+00 : f32
    %117 = vector.broadcast %cst_9 : f32 to vector<1x128xf32>
    %118 = arith.maximumf %116, %117 : vector<1x128xf32>
    %c62 = arith.constant 62 : index
    %119 = memref.load %arg1[%c62] : memref<75xf32, #tpu.memory_space<smem>>
    %120 = vector.broadcast %119 : f32 to vector<1x128xf32>
    %121 = arith.mulf %120, %118 : vector<1x128xf32>
    %c20 = arith.constant 20 : index
    %122 = memref.load %arg1[%c20] : memref<75xf32, #tpu.memory_space<smem>>
    %123 = vector.broadcast %122 : f32 to vector<1x128xf32>
    %124 = arith.mulf %123, %28 : vector<1x128xf32>
    %c21 = arith.constant 21 : index
    %125 = memref.load %arg1[%c21] : memref<75xf32, #tpu.memory_space<smem>>
    %126 = vector.broadcast %125 : f32 to vector<1x128xf32>
    %127 = arith.mulf %126, %40 : vector<1x128xf32>
    %128 = arith.addf %124, %127 : vector<1x128xf32>
    %c47 = arith.constant 47 : index
    %129 = memref.load %arg1[%c47] : memref<75xf32, #tpu.memory_space<smem>>
    %130 = vector.broadcast %129 : f32 to vector<1x128xf32>
    %131 = arith.addf %128, %130 : vector<1x128xf32>
    %cst_10 = arith.constant 0.000000e+00 : f32
    %132 = vector.broadcast %cst_10 : f32 to vector<1x128xf32>
    %133 = arith.maximumf %131, %132 : vector<1x128xf32>
    %c63 = arith.constant 63 : index
    %134 = memref.load %arg1[%c63] : memref<75xf32, #tpu.memory_space<smem>>
    %135 = vector.broadcast %134 : f32 to vector<1x128xf32>
    %136 = arith.mulf %135, %133 : vector<1x128xf32>
    %137 = arith.addf %121, %136 : vector<1x128xf32>
    %c22 = arith.constant 22 : index
    %138 = memref.load %arg1[%c22] : memref<75xf32, #tpu.memory_space<smem>>
    %139 = vector.broadcast %138 : f32 to vector<1x128xf32>
    %140 = arith.mulf %139, %28 : vector<1x128xf32>
    %c23 = arith.constant 23 : index
    %141 = memref.load %arg1[%c23] : memref<75xf32, #tpu.memory_space<smem>>
    %142 = vector.broadcast %141 : f32 to vector<1x128xf32>
    %143 = arith.mulf %142, %40 : vector<1x128xf32>
    %144 = arith.addf %140, %143 : vector<1x128xf32>
    %c48 = arith.constant 48 : index
    %145 = memref.load %arg1[%c48] : memref<75xf32, #tpu.memory_space<smem>>
    %146 = vector.broadcast %145 : f32 to vector<1x128xf32>
    %147 = arith.addf %144, %146 : vector<1x128xf32>
    %cst_11 = arith.constant 0.000000e+00 : f32
    %148 = vector.broadcast %cst_11 : f32 to vector<1x128xf32>
    %149 = arith.maximumf %147, %148 : vector<1x128xf32>
    %c64 = arith.constant 64 : index
    %150 = memref.load %arg1[%c64] : memref<75xf32, #tpu.memory_space<smem>>
    %151 = vector.broadcast %150 : f32 to vector<1x128xf32>
    %152 = arith.mulf %151, %149 : vector<1x128xf32>
    %153 = arith.addf %137, %152 : vector<1x128xf32>
    %c24 = arith.constant 24 : index
    %154 = memref.load %arg1[%c24] : memref<75xf32, #tpu.memory_space<smem>>
    %155 = vector.broadcast %154 : f32 to vector<1x128xf32>
    %156 = arith.mulf %155, %28 : vector<1x128xf32>
    %c25 = arith.constant 25 : index
    %157 = memref.load %arg1[%c25] : memref<75xf32, #tpu.memory_space<smem>>
    %158 = vector.broadcast %157 : f32 to vector<1x128xf32>
    %159 = arith.mulf %158, %40 : vector<1x128xf32>
    %160 = arith.addf %156, %159 : vector<1x128xf32>
    %c49 = arith.constant 49 : index
    %161 = memref.load %arg1[%c49] : memref<75xf32, #tpu.memory_space<smem>>
    %162 = vector.broadcast %161 : f32 to vector<1x128xf32>
    %163 = arith.addf %160, %162 : vector<1x128xf32>
    %cst_12 = arith.constant 0.000000e+00 : f32
    %164 = vector.broadcast %cst_12 : f32 to vector<1x128xf32>
    %165 = arith.maximumf %163, %164 : vector<1x128xf32>
    %c65 = arith.constant 65 : index
    %166 = memref.load %arg1[%c65] : memref<75xf32, #tpu.memory_space<smem>>
    %167 = vector.broadcast %166 : f32 to vector<1x128xf32>
    %168 = arith.mulf %167, %165 : vector<1x128xf32>
    %169 = arith.addf %153, %168 : vector<1x128xf32>
    %c26 = arith.constant 26 : index
    %170 = memref.load %arg1[%c26] : memref<75xf32, #tpu.memory_space<smem>>
    %171 = vector.broadcast %170 : f32 to vector<1x128xf32>
    %172 = arith.mulf %171, %28 : vector<1x128xf32>
    %c27 = arith.constant 27 : index
    %173 = memref.load %arg1[%c27] : memref<75xf32, #tpu.memory_space<smem>>
    %174 = vector.broadcast %173 : f32 to vector<1x128xf32>
    %175 = arith.mulf %174, %40 : vector<1x128xf32>
    %176 = arith.addf %172, %175 : vector<1x128xf32>
    %c50 = arith.constant 50 : index
    %177 = memref.load %arg1[%c50] : memref<75xf32, #tpu.memory_space<smem>>
    %178 = vector.broadcast %177 : f32 to vector<1x128xf32>
    %179 = arith.addf %176, %178 : vector<1x128xf32>
    %cst_13 = arith.constant 0.000000e+00 : f32
    %180 = vector.broadcast %cst_13 : f32 to vector<1x128xf32>
    %181 = arith.maximumf %179, %180 : vector<1x128xf32>
    %c66 = arith.constant 66 : index
    %182 = memref.load %arg1[%c66] : memref<75xf32, #tpu.memory_space<smem>>
    %183 = vector.broadcast %182 : f32 to vector<1x128xf32>
    %184 = arith.mulf %183, %181 : vector<1x128xf32>
    %c28 = arith.constant 28 : index
    %185 = memref.load %arg1[%c28] : memref<75xf32, #tpu.memory_space<smem>>
    %186 = vector.broadcast %185 : f32 to vector<1x128xf32>
    %187 = arith.mulf %186, %28 : vector<1x128xf32>
    %c29 = arith.constant 29 : index
    %188 = memref.load %arg1[%c29] : memref<75xf32, #tpu.memory_space<smem>>
    %189 = vector.broadcast %188 : f32 to vector<1x128xf32>
    %190 = arith.mulf %189, %40 : vector<1x128xf32>
    %191 = arith.addf %187, %190 : vector<1x128xf32>
    %c51 = arith.constant 51 : index
    %192 = memref.load %arg1[%c51] : memref<75xf32, #tpu.memory_space<smem>>
    %193 = vector.broadcast %192 : f32 to vector<1x128xf32>
    %194 = arith.addf %191, %193 : vector<1x128xf32>
    %cst_14 = arith.constant 0.000000e+00 : f32
    %195 = vector.broadcast %cst_14 : f32 to vector<1x128xf32>
    %196 = arith.maximumf %194, %195 : vector<1x128xf32>
    %c67 = arith.constant 67 : index
    %197 = memref.load %arg1[%c67] : memref<75xf32, #tpu.memory_space<smem>>
    %198 = vector.broadcast %197 : f32 to vector<1x128xf32>
    %199 = arith.mulf %198, %196 : vector<1x128xf32>
    %200 = arith.addf %184, %199 : vector<1x128xf32>
    %c30 = arith.constant 30 : index
    %201 = memref.load %arg1[%c30] : memref<75xf32, #tpu.memory_space<smem>>
    %202 = vector.broadcast %201 : f32 to vector<1x128xf32>
    %203 = arith.mulf %202, %28 : vector<1x128xf32>
    %c31 = arith.constant 31 : index
    %204 = memref.load %arg1[%c31] : memref<75xf32, #tpu.memory_space<smem>>
    %205 = vector.broadcast %204 : f32 to vector<1x128xf32>
    %206 = arith.mulf %205, %40 : vector<1x128xf32>
    %207 = arith.addf %203, %206 : vector<1x128xf32>
    %c52 = arith.constant 52 : index
    %208 = memref.load %arg1[%c52] : memref<75xf32, #tpu.memory_space<smem>>
    %209 = vector.broadcast %208 : f32 to vector<1x128xf32>
    %210 = arith.addf %207, %209 : vector<1x128xf32>
    %cst_15 = arith.constant 0.000000e+00 : f32
    %211 = vector.broadcast %cst_15 : f32 to vector<1x128xf32>
    %212 = arith.maximumf %210, %211 : vector<1x128xf32>
    %c68 = arith.constant 68 : index
    %213 = memref.load %arg1[%c68] : memref<75xf32, #tpu.memory_space<smem>>
    %214 = vector.broadcast %213 : f32 to vector<1x128xf32>
    %215 = arith.mulf %214, %212 : vector<1x128xf32>
    %216 = arith.addf %200, %215 : vector<1x128xf32>
    %c32 = arith.constant 32 : index
    %217 = memref.load %arg1[%c32] : memref<75xf32, #tpu.memory_space<smem>>
    %218 = vector.broadcast %217 : f32 to vector<1x128xf32>
    %219 = arith.mulf %218, %28 : vector<1x128xf32>
    %c33 = arith.constant 33 : index
    %220 = memref.load %arg1[%c33] : memref<75xf32, #tpu.memory_space<smem>>
    %221 = vector.broadcast %220 : f32 to vector<1x128xf32>
    %222 = arith.mulf %221, %40 : vector<1x128xf32>
    %223 = arith.addf %219, %222 : vector<1x128xf32>
    %c53 = arith.constant 53 : index
    %224 = memref.load %arg1[%c53] : memref<75xf32, #tpu.memory_space<smem>>
    %225 = vector.broadcast %224 : f32 to vector<1x128xf32>
    %226 = arith.addf %223, %225 : vector<1x128xf32>
    %cst_16 = arith.constant 0.000000e+00 : f32
    %227 = vector.broadcast %cst_16 : f32 to vector<1x128xf32>
    %228 = arith.maximumf %226, %227 : vector<1x128xf32>
    %c69 = arith.constant 69 : index
    %229 = memref.load %arg1[%c69] : memref<75xf32, #tpu.memory_space<smem>>
    %230 = vector.broadcast %229 : f32 to vector<1x128xf32>
    %231 = arith.mulf %230, %228 : vector<1x128xf32>
    %232 = arith.addf %216, %231 : vector<1x128xf32>
    %c34 = arith.constant 34 : index
    %233 = memref.load %arg1[%c34] : memref<75xf32, #tpu.memory_space<smem>>
    %234 = vector.broadcast %233 : f32 to vector<1x128xf32>
    %235 = arith.mulf %234, %28 : vector<1x128xf32>
    %c35 = arith.constant 35 : index
    %236 = memref.load %arg1[%c35] : memref<75xf32, #tpu.memory_space<smem>>
    %237 = vector.broadcast %236 : f32 to vector<1x128xf32>
    %238 = arith.mulf %237, %40 : vector<1x128xf32>
    %239 = arith.addf %235, %238 : vector<1x128xf32>
    %c54 = arith.constant 54 : index
    %240 = memref.load %arg1[%c54] : memref<75xf32, #tpu.memory_space<smem>>
    %241 = vector.broadcast %240 : f32 to vector<1x128xf32>
    %242 = arith.addf %239, %241 : vector<1x128xf32>
    %cst_17 = arith.constant 0.000000e+00 : f32
    %243 = vector.broadcast %cst_17 : f32 to vector<1x128xf32>
    %244 = arith.maximumf %242, %243 : vector<1x128xf32>
    %c70 = arith.constant 70 : index
    %245 = memref.load %arg1[%c70] : memref<75xf32, #tpu.memory_space<smem>>
    %246 = vector.broadcast %245 : f32 to vector<1x128xf32>
    %247 = arith.mulf %246, %244 : vector<1x128xf32>
    %c36 = arith.constant 36 : index
    %248 = memref.load %arg1[%c36] : memref<75xf32, #tpu.memory_space<smem>>
    %249 = vector.broadcast %248 : f32 to vector<1x128xf32>
    %250 = arith.mulf %249, %28 : vector<1x128xf32>
    %c37 = arith.constant 37 : index
    %251 = memref.load %arg1[%c37] : memref<75xf32, #tpu.memory_space<smem>>
    %252 = vector.broadcast %251 : f32 to vector<1x128xf32>
    %253 = arith.mulf %252, %40 : vector<1x128xf32>
    %254 = arith.addf %250, %253 : vector<1x128xf32>
    %c55 = arith.constant 55 : index
    %255 = memref.load %arg1[%c55] : memref<75xf32, #tpu.memory_space<smem>>
    %256 = vector.broadcast %255 : f32 to vector<1x128xf32>
    %257 = arith.addf %254, %256 : vector<1x128xf32>
    %cst_18 = arith.constant 0.000000e+00 : f32
    %258 = vector.broadcast %cst_18 : f32 to vector<1x128xf32>
    %259 = arith.maximumf %257, %258 : vector<1x128xf32>
    %c71 = arith.constant 71 : index
    %260 = memref.load %arg1[%c71] : memref<75xf32, #tpu.memory_space<smem>>
    %261 = vector.broadcast %260 : f32 to vector<1x128xf32>
    %262 = arith.mulf %261, %259 : vector<1x128xf32>
    %263 = arith.addf %247, %262 : vector<1x128xf32>
    %c38 = arith.constant 38 : index
    %264 = memref.load %arg1[%c38] : memref<75xf32, #tpu.memory_space<smem>>
    %265 = vector.broadcast %264 : f32 to vector<1x128xf32>
    %266 = arith.mulf %265, %28 : vector<1x128xf32>
    %c39 = arith.constant 39 : index
    %267 = memref.load %arg1[%c39] : memref<75xf32, #tpu.memory_space<smem>>
    %268 = vector.broadcast %267 : f32 to vector<1x128xf32>
    %269 = arith.mulf %268, %40 : vector<1x128xf32>
    %270 = arith.addf %266, %269 : vector<1x128xf32>
    %c56 = arith.constant 56 : index
    %271 = memref.load %arg1[%c56] : memref<75xf32, #tpu.memory_space<smem>>
    %272 = vector.broadcast %271 : f32 to vector<1x128xf32>
    %273 = arith.addf %270, %272 : vector<1x128xf32>
    %cst_19 = arith.constant 0.000000e+00 : f32
    %274 = vector.broadcast %cst_19 : f32 to vector<1x128xf32>
    %275 = arith.maximumf %273, %274 : vector<1x128xf32>
    %c72 = arith.constant 72 : index
    %276 = memref.load %arg1[%c72] : memref<75xf32, #tpu.memory_space<smem>>
    %277 = vector.broadcast %276 : f32 to vector<1x128xf32>
    %278 = arith.mulf %277, %275 : vector<1x128xf32>
    %279 = arith.addf %263, %278 : vector<1x128xf32>
    %c40 = arith.constant 40 : index
    %280 = memref.load %arg1[%c40] : memref<75xf32, #tpu.memory_space<smem>>
    %281 = vector.broadcast %280 : f32 to vector<1x128xf32>
    %282 = arith.mulf %281, %28 : vector<1x128xf32>
    %c41 = arith.constant 41 : index
    %283 = memref.load %arg1[%c41] : memref<75xf32, #tpu.memory_space<smem>>
    %284 = vector.broadcast %283 : f32 to vector<1x128xf32>
    %285 = arith.mulf %284, %40 : vector<1x128xf32>
    %286 = arith.addf %282, %285 : vector<1x128xf32>
    %c57 = arith.constant 57 : index
    %287 = memref.load %arg1[%c57] : memref<75xf32, #tpu.memory_space<smem>>
    %288 = vector.broadcast %287 : f32 to vector<1x128xf32>
    %289 = arith.addf %286, %288 : vector<1x128xf32>
    %cst_20 = arith.constant 0.000000e+00 : f32
    %290 = vector.broadcast %cst_20 : f32 to vector<1x128xf32>
    %291 = arith.maximumf %289, %290 : vector<1x128xf32>
    %c73 = arith.constant 73 : index
    %292 = memref.load %arg1[%c73] : memref<75xf32, #tpu.memory_space<smem>>
    %293 = vector.broadcast %292 : f32 to vector<1x128xf32>
    %294 = arith.mulf %293, %291 : vector<1x128xf32>
    %295 = arith.addf %279, %294 : vector<1x128xf32>
    %296 = arith.addf %106, %169 : vector<1x128xf32>
    %297 = arith.addf %232, %295 : vector<1x128xf32>
    %298 = arith.addf %296, %297 : vector<1x128xf32>
    %c0_21 = arith.constant 0 : index
    %c0_22 = arith.constant 0 : index
    %299 = vector.load %arg3[%c0_21, %c0_22] : memref<1x128xf32, #tpu.memory_space<vmem>>, vector<1x128xf32>
    tpu.vector_store %arg3[%c0_21, %c0_22], %298 {strides = array<i32>} : memref<1x128xf32, #tpu.memory_space<vmem>>, vector<1x128xf32>,
    return
  }
  func.func @transform_0(%arg0: i32, %arg1: memref<75xf32, #tpu.memory_space<smem>>) -> (i32, i32) {
    %c0_i32 = arith.constant 0 : i32
    %c0_i32_0 = arith.constant 0 : i32
    return %arg0, %c0_i32 : i32, i32
  }
  func.func @transform_1(%arg0: i32, %arg1: memref<75xf32, #tpu.memory_space<smem>>) -> (i32, i32) {
    %c0_i32 = arith.constant 0 : i32
    %c0_i32_0 = arith.constant 0 : i32
    return %arg0, %c0_i32 : i32, i32
  }
}

</mosaic_0001>

<bundles_post_ra>
// kernel: tpu_custom_call.1
= control target key start
LH: loop header
LB: loop body
LE: loop exit
PB: predicated region body
PF: predicated region fallthrough
CT: control target
= control target key end

     0   :  { %s724_s0 = inlined_call_operand.hbm [shape: f32[75], index: 0, kind: input, shape index: {}]   ;;  %s725_s1 = inlined_call_operand.vmem [shape: f32[1,128], index: 1, kind: input, shape index: {}]   ;;  %s726_s2 = inlined_call_operand.hbm [shape: f32[1,128], index: 2, kind: output, shape index: {}]  }
   0x1   :  { %s384_s11 = scalar_lea.hbm %s724_s0, 16 }
   0x2   :  { %p385_p0 = scmp.ne.s32.totalorder %s724_s0, %s384_s11  ;;  %p388_p1 = scmp.lt.u32.totalorder %s384_s11, %s724_s0 }
   0x4   :  { %p390_p2 = pnand %p388_p1, %p385_p0 }
   0x6   :  { %393 = shalt.err (!%p390_p2)  }
   0x7   :  { %s420_s16 = smov [#allocation3]  }
   0x8   :  { %8 = dma.hbm_to_smem %s724_s0, 16, %s420_s16, [#allocation2] }
   0x9   :  { %416 = dma.done.wait [#allocation2], 16 }
   0xa   :  { %417 = vsyncadd [#allocation2], 4294967280 }
   0xb   :  { %10 = sfence }
   0xc   :  { %11 = vsyncpa [#allocation5], 0  ;;  %s15_s19 = sld [smem:[#allocation3]]  ;;  %s308_s20 = sld [smem:[#allocation3 + $0x2]]  ;;  %v14_v0 = vld [vmem:[%s725_s1] sm:$0x1] }
   0xd   :  { %s309_s21 = sld [smem:[#allocation3 + $0x1]]  ;;  %s310_s22 = sld [smem:[#allocation3 + $0x3]] }
   0xe   :  { %s449_s23 = sld [smem:[#allocation3 + $0x4]]  ;;  %s451_s24 = sld [smem:[#allocation3 + $0x5]] }
   0xf   :  { %s314_s27 = sld [smem:[#allocation3 + $0x6]]  ;;  %s456_s28 = sld [smem:[#allocation3 + $0x7]] }
  0x10   :  { %s458_s0 = sld [smem:[#allocation3 + $0x8]]  ;;  %s460_s29 = sld [smem:[#allocation3 + $0x9]] }
  0x11   :  { %s462_s30 = sld [smem:[#allocation3 + $0xa]]  ;;  %s464_s3 = sld [smem:[#allocation3 + $0xb]] }
  0x12   :  { %v16_v1 = vstv %s15_s19  ;;  %v19_v3 = vstv %s308_s20  ;;  %s466_s1 = sld [smem:[#allocation3 + $0x2a]]  ;;  %s468_s4 = sld [smem:[#allocation3 + $0xc]] }
  0x13   :  { %v17_v2 = vmul.f32 %v16_v1, %v14_v0  ;;  %v23_v4 = vstv %s309_s21  ;;  %v26_v6 = vstv %s310_s22  ;;  %s470_s5 = sld [smem:[#allocation3 + $0xd]]  ;;  %s473_s6 = sld [smem:[#allocation3 + $0x2b]] }
  0x14   :  { %v24_v5 = vmul.f32 %v23_v4, %v14_v0  ;;  %v30_v9 = vstv %s449_s23  ;;  %s475_s7 = sld [smem:[#allocation3 + $0xe]]  ;;  %v33_v12 = vstv %s451_s24  ;;  %s479_s8 = sld [smem:[#allocation3 + $0xf]] }
  0x15   :  { %v20_v7 = vadd.f32 %v19_v3, %v17_v2  ;;  %v41_v10 = vstv %s314_s27  ;;  %v44_v13 = vstv %s456_s28  ;;  %s481_s9 = sld [smem:[#allocation3 + $0x2c]]  ;;  %s483_s10 = sld [smem:[#allocation3 + $0x10]] }
  0x16   :  { %v27_v8 = vadd.f32 %v26_v6, %v24_v5  ;;  %s485_s11 = sld [smem:[#allocation3 + $0x11]]  ;;  %s487_s12 = sld [smem:[#allocation3 + $0x2d]]  ;;  %v37_v19 = vstv %s458_s0  ;;  %v48_v20 = vstv %s460_s29 }
  0x17   :  { %v21_v11 = vmax.f32 %v20_v7, 0.0  ;;  %s489_s13 = sld [smem:[#allocation3 + $0x12]]  ;;  %s491_s14 = sld [smem:[#allocation3 + $0x13]]  ;;  %v52_v23 = vstv %s462_s30  ;;  %v55_v24 = vstv %s464_s3 }
  0x18   :  { %v28_v14 = vmax.f32 %v27_v8, 0.0  ;;  %s495_s15 = sld [smem:[#allocation3 + $0x2e]]  ;;  %v59_v25 = vstv %s466_s1  ;;  %s500_s16 = sld [smem:[#allocation3 + $0x14]]  ;;  %v69_v28 = vstv %s468_s4 }
  0x19   :  { %v31_v15 = vmul.f32 %v30_v9, %v21_v11  ;;  %v42_v16 = vmul.f32 %v41_v10, %v21_v11  ;;  %s502_s17 = sld [smem:[#allocation3 + $0x15]]  ;;  %v72_v29 = vstv %s470_s5  ;;  %s506_s18 = sld [smem:[#allocation3 + $0x3a]]  ;;  %v76_v30 = vstv %s473_s6 }
  0x1a   :  { %v34_v17 = vmul.f32 %v33_v12, %v28_v14  ;;  %v45_v18 = vmul.f32 %v44_v13, %v28_v14  ;;  %v84_v31 = vstv %s475_s7  ;;  %v87_v32 = vstv %s479_s8  ;;  %s518_s19 = sld [smem:[#allocation3 + $0x2f]]  ;;  %s524_s20 = sld [smem:[#allocation3 + $0x16]] }
  0x1b   :  { %v91_v33 = vstv %s481_s9  ;;  %v99_v36 = vstv %s483_s10  ;;  %s528_s21 = sld [smem:[#allocation3 + $0x4a]]  ;;  %s532_s22 = sld [smem:[#allocation3 + $0x3b]] }
  0x1c   :  { %v35_v21 = vadd.f32 %v34_v17, %v31_v15  ;;  %v46_v22 = vadd.f32 %v45_v18, %v42_v16  ;;  %v102_v37 = vstv %s485_s11  ;;  %v106_v38 = vstv %s487_s12  ;;  %s536_s23 = sld [smem:[#allocation3 + $0x3c]]  ;;  %s540_s24 = sld [smem:[#allocation3 + $0x17]] }
  0x1d   :  { %v114_v39 = vstv %s489_s13  ;;  %v117_v40 = vstv %s491_s14  ;;  %s544_s25 = sld [smem:[#allocation3 + $0x3d]]  ;;  %s546_s26 = sld [smem:[#allocation3 + $0x3e]] }
  0x1e   :  { %v38_v26 = vadd.f32 %v37_v19, %v35_v21  ;;  %v49_v27 = vadd.f32 %v48_v20, %v46_v22  ;;  %v121_v41 = vstv %s495_s15  ;;  %v128_v56 = vstv %s500_s16  ;;  %s551_s27 = sld [smem:[#allocation3 + $0x18]]  ;;  %s553_s28 = sld [smem:[#allocation3 + $0x19]] }
  0x1f   :  { %v131_v57 = vstv %s502_s17  ;;  %v63_v62 = vstv %s506_s18  ;;  %s557_s0 = sld [smem:[#allocation3 + $0x3f]]  ;;  %s559_s29 = sld [smem:[#allocation3 + $0x1a]] }
  0x20   :  { %v512_v34 = vmax.f32 %v38_v26, 0.0  ;;  %v514_v35 = vmax.f32 %v49_v27, 0.0  ;;  %v135_v4 = vstv %s518_s19  ;;  %s562_s30 = sld [smem:[#allocation3 + $0x30]]  ;;  %v143_v7 = vstv %s524_s20  ;;  %s567_s1 = sld [smem:[#allocation3 + $0x1b]] }
  0x21   :  { %s565_s3 = sld [smem:[#allocation3 + $0x40]]  ;;  %v66_v9 = vstv %s528_s21  ;;  %v80_v10 = vstv %s532_s22  ;;  %s571_s4 = sld [smem:[#allocation3 + $0x31]] }
  0x22   :  { %v53_v42 = vmul.f32 %v52_v23, %v512_v34  ;;  %v56_v43 = vmul.f32 %v55_v24, %v514_v35  ;;  %v70_v44 = vmul.f32 %v69_v28, %v512_v34  ;;  %v73_v45 = vmul.f32 %v72_v29, %v514_v35  ;;  %s573_s5 = sld [smem:[#allocation3 + $0x32]]  ;;  %s577_s6 = sld [smem:[#allocation3 + $0x1c]] }
  0x23   :  { %v85_v46 = vmul.f32 %v84_v31, %v512_v34  ;;  %v88_v47 = vmul.f32 %v87_v32, %v514_v35  ;;  %v100_v48 = vmul.f32 %v99_v36, %v512_v34  ;;  %v103_v49 = vmul.f32 %v102_v37, %v514_v35  ;;  %s579_s7 = sld [smem:[#allocation3 + $0x1d]]  ;;  %s583_s8 = sld [smem:[#allocation3 + $0x41]] }
  0x24   :  { %v57_v50 = vadd.f32 %v56_v43, %v53_v42  ;;  %v74_v51 = vadd.f32 %v73_v45, %v70_v44  ;;  %v115_v52 = vmul.f32 %v114_v39, %v512_v34  ;;  %v118_v53 = vmul.f32 %v117_v40, %v514_v35  ;;  %s587_s9 = sld [smem:[#allocation3 + $0x1e]]  ;;  %s589_s10 = sld [smem:[#allocation3 + $0x1f]] }
  0x25   :  { %v89_v54 = vadd.f32 %v88_v47, %v85_v46  ;;  %v104_v55 = vadd.f32 %v103_v49, %v100_v48  ;;  %v129_v61 = vmul.f32 %v128_v56, %v512_v34  ;;  %v132_v0 = vmul.f32 %v131_v57, %v514_v35  ;;  %s593_s11 = sld [smem:[#allocation3 + $0x33]]  ;;  %s597_s12 = sld [smem:[#allocation3 + $0x42]] }
  0x26   :  { %v60_v58 = vadd.f32 %v59_v25, %v57_v50  ;;  %v77_v59 = vadd.f32 %v76_v30, %v74_v51  ;;  %v119_v60 = vadd.f32 %v118_v53, %v115_v52  ;;  %v95_v12 = vstv %s536_s23  ;;  %s599_s13 = sld [smem:[#allocation3 + $0x20]]  ;;  %s606_s14 = sld [smem:[#allocation3 + $0x34]] }
  0x27   :  { %v92_v63 = vadd.f32 %v91_v33, %v89_v54  ;;  %v107_v2 = vadd.f32 %v106_v38, %v104_v55  ;;  %v133_v6 = vadd.f32 %v132_v0, %v129_v61  ;;  %v146_v14 = vstv %s540_s24  ;;  %s608_s15 = sld [smem:[#allocation3 + $0x21]]  ;;  %s614_s16 = sld [smem:[#allocation3 + $0x43]] }
  0x28   :  { %v61_v1 = vmax.f32 %v60_v58, 0.0  ;;  %v122_v3 = vadd.f32 %v121_v41, %v119_v60  ;;  %v78_v5 = vmax.f32 %v77_v59, 0.0  ;;  %v144_v17 = vmul.f32 %v143_v7, %v512_v34  ;;  %s618_s17 = sld [smem:[#allocation3 + $0x22]]  ;;  %s620_s18 = sld [smem:[#allocation3 + $0x23]] }
  0x29   :  { %v93_v11 = vmax.f32 %v92_v63, 0.0  ;;  %v136_v13 = vadd.f32 %v135_v4, %v133_v6  ;;  %v108_v15 = vmax.f32 %v107_v2, 0.0  ;;  %v147_v18 = vmul.f32 %v146_v14, %v514_v35  ;;  %s628_s19 = sld [smem:[#allocation3 + $0x35]]  ;;  %s630_s20 = sld [smem:[#allocation3 + $0x24]] }
  0x2a   :  { %v64_v8 = vmul.f32 %v63_v62, %v61_v1  ;;  %v123_v16 = vmax.f32 %v122_v3, 0.0  ;;  %v81_v19 = vmul.f32 %v80_v10, %v78_v5  ;;  %v110_v20 = vstv %s544_s25  ;;  %s635_s21 = sld [smem:[#allocation3 + $0x36]]  ;;  %s641_s22 = sld [smem:[#allocation3 + $0x25]] }
  0x2b   :  { %v125_v21 = vstv %s546_s26  ;;  %v137_v23 = vmax.f32 %v136_v13, 0.0  ;;  %v158_v24 = vstv %s551_s27  ;;  %v161_v25 = vstv %s553_s28  ;;  %s645_s23 = sld [smem:[#allocation3 + $0x44]]  ;;  %s648_s24 = sld [smem:[#allocation3 + $0x37]] }
  0x2c   :  { %v67_v22 = vadd.f32 %v66_v9, %v64_v8  ;;  %v96_v26 = vmul.f32 %v95_v12, %v93_v11  ;;  %v139_v27 = vstv %s557_s0  ;;  %v173_v28 = vstv %s559_s29  ;;  %s653_s25 = sld [smem:[#allocation3 + $0x26]]  ;;  %s655_s26 = sld [smem:[#allocation3 + $0x27]] }
  0x2d   :  { %v601_v29 = vmul.f32 %v110_v20, %v108_v15  ;;  %v603_v30 = vmul.f32 %v125_v21, %v123_v16  ;;  %v148_v31 = vadd.f32 %v147_v18, %v144_v17  ;;  %v174_v32 = vmul.f32 %v173_v28, %v512_v34  ;;  %s660_s27 = sld [smem:[#allocation3 + $0x46]]  ;;  %s662_s28 = sld [smem:[#allocation3 + $0x47]] }
  0x2e   :  { %v150_v33 = vstv %s562_s30  ;;  %v159_v36 = vmul.f32 %v158_v24, %v512_v34  ;;  %v162_v37 = vmul.f32 %v161_v25, %v514_v35  ;;  %v176_v38 = vstv %s567_s1  ;;  %s667_s0 = sld [smem:[#allocation3 + $0x28]]  ;;  %s672_s30 = sld [smem:[#allocation3 + $0x29]] }
  0x2f   :  { %v82_v39 = vadd.f32 %v81_v19, %v67_v22  ;;  %v140_v40 = vmul.f32 %v139_v27, %v137_v23  ;;  %v154_v41 = vstv %s565_s3  ;;  %v177_v42 = vmul.f32 %v176_v38, %v514_v35  ;;  %s670_s29 = sld [smem:[#allocation3 + $0x38]]  ;;  %s679_s3 = sld [smem:[#allocation3 + $0x45]] }
  0x30   :  { %v165_v43 = vstv %s571_s4  ;;  %v180_v44 = vstv %s573_s5  ;;  %v187_v45 = vstv %s577_s6  ;;  %v190_v46 = vstv %s579_s7  ;;  %s683_s1 = sld [smem:[#allocation3 + $0x39]]  ;;  %s688_s4 = sld [smem:[#allocation3 + $0x48]] }
  0x31   :  { %v151_v47 = vadd.f32 %v150_v33, %v148_v31  ;;  %v169_v48 = vstv %s583_s8  ;;  %v178_v49 = vadd.f32 %v177_v42, %v174_v32  ;;  %v188_v50 = vmul.f32 %v187_v45, %v512_v34  ;;  %s696_s5 = sld [smem:[#allocation3 + $0x49]]  ;;  %s421_s6 = smov [#allocation4]  }
  0x32   :  { %v163_v51 = vadd.f32 %v162_v37, %v159_v36  ;;  %v191_v52 = vmul.f32 %v190_v46, %v514_v35  ;;  %v202_v53 = vstv %s587_s9  ;;  %v205_v54 = vstv %s589_s10  ;;  %s300_s7 = sshll.u32 %s421_s6, 4  ;;  %s301_s7 = int_to_ptr.vmem [resolvable:$true] %s300_s7 }
  0x33   :  { %v637_v55 = vadd.f32 %v96_v26, %v82_v39  ;;  %v181_v56 = vadd.f32 %v180_v44, %v178_v49  ;;  %v194_v57 = vstv %s593_s11  ;;  %v203_v58 = vmul.f32 %v202_v53, %v512_v34  ;;  %s394_s8 = scalar_lea.vmem %s301_s7, 16  ;;  %s398_s9 = scalar_lea.vmem %s301_s7, 32 }
  0x34   :  { %v184_v59 = vstv %s597_s12  ;;  %v192_v60 = vadd.f32 %v191_v52, %v188_v50  ;;  %v206_v61 = vmul.f32 %v205_v54, %v514_v35  ;;  %v217_v62 = vstv %s599_s13  ;;  %p395_p3 = scmp.ne.s32.totalorder %s301_s7, %s394_s8  ;;  %p399_p4 = scmp.lt.s32.totalorder %s301_s7, %s301_s7 }
  0x35   :  { %v152_v63 = vmax.f32 %v151_v47, 0.0  ;;  %v209_v0 = vstv %s606_s14  ;;  %v218_v1 = vmul.f32 %v217_v62, %v512_v34  ;;  %v220_v2 = vstv %s608_s15  ;;  %p400_p5 = scmp.lt.s32.totalorder %s398_s9, %s394_s8 }
  0x36   :  { %v657_v3 = vadd.f32 %v165_v43, %v163_v51  ;;  %v195_v4 = vadd.f32 %v194_v57, %v192_v60  ;;  %v207_v5 = vadd.f32 %v206_v61, %v203_v58  ;;  %v221_v6 = vmul.f32 %v220_v2, %v514_v35 }
  0x37   :  { %v182_v7 = vmax.f32 %v181_v56, 0.0  ;;  %v198_v8 = vstv %s614_s16  ;;  %v232_v9 = vstv %s618_s17  ;;  %v235_v10 = vstv %s620_s18  ;;  %p401_p6 = por %p400_p5, %p399_p4 }
  0x38   :  { %v196_v11 = vmax.f32 %v195_v4, 0.0  ;;  %v210_v12 = vadd.f32 %v209_v0, %v207_v5  ;;  %v222_v13 = vadd.f32 %v221_v6, %v218_v1  ;;  %v233_v14 = vmul.f32 %v232_v9, %v512_v34 }
  0x39   :  { %v141_v15 = vadd.f32 %v140_v40, %v603_v30  ;;  %v224_v16 = vstv %s628_s19  ;;  %v236_v17 = vmul.f32 %v235_v10, %v514_v35  ;;  %v246_v18 = vstv %s630_s20  ;;  %p402_p7 = pnand %p401_p6, %p395_p3 }
  0x3a   :  { %v155_v19 = vmul.f32 %v154_v41, %v152_v63  ;;  %v167_v20 = vmax.f32 %v657_v3, 0.0  ;;  %v239_v21 = vstv %s635_s21  ;;  %v247_v22 = vmul.f32 %v246_v18, %v512_v34 }
  0x3b   :  { %v185_v23 = vmul.f32 %v184_v59, %v182_v7  ;;  %v199_v24 = vmul.f32 %v198_v8, %v196_v11  ;;  %v237_v25 = vadd.f32 %v236_v17, %v233_v14  ;;  %v249_v26 = vstv %s641_s22 }
  0x3c   :  { %v211_v27 = vmax.f32 %v210_v12, 0.0  ;;  %v213_v28 = vstv %s645_s23  ;;  %v225_v30 = vadd.f32 %v224_v16, %v222_v13  ;;  %v250_v31 = vmul.f32 %v249_v26, %v514_v35 }
  0x3d   :  { %v240_v32 = vadd.f32 %v239_v21, %v237_v25  ;;  %v253_v33 = vstv %s648_s24  ;;  %v261_v36 = vstv %s653_s25  ;;  %v264_v37 = vstv %s655_s26 }
  0x3e   :  { %v243_v38 = vstv %s660_s27  ;;  %v251_v39 = vadd.f32 %v250_v31, %v247_v22  ;;  %v257_v40 = vstv %s662_s28  ;;  %v262_v41 = vmul.f32 %v261_v36, %v512_v34 }
  0x3f   :  { %v200_v42 = vadd.f32 %v199_v24, %v185_v23  ;;  %v241_v43 = vmax.f32 %v240_v32, 0.0  ;;  %v265_v44 = vmul.f32 %v264_v37, %v514_v35  ;;  %v276_v45 = vstv %s667_s0 }
  0x40   :  { %v254_v46 = vadd.f32 %v253_v33, %v251_v39  ;;  %v268_v47 = vstv %s670_s29  ;;  %v277_v49 = vmul.f32 %v276_v45, %v512_v34  ;;  %v279_v50 = vstv %s672_s30 }
  0x41   :  { %v214_v51 = vmul.f32 %v213_v28, %v211_v27  ;;  %v226_v52 = vmax.f32 %v225_v30, 0.0  ;;  %v266_v53 = vadd.f32 %v265_v44, %v262_v41  ;;  %v280_v54 = vmul.f32 %v279_v50, %v514_v35 }
  0x42   :  { %v228_v56 = vstv %s679_s3  ;;  %v244_v57 = vmul.f32 %v243_v38, %v241_v43  ;;  %v255_v58 = vmax.f32 %v254_v46, 0.0  ;;  %v283_v59 = vstv %s683_s1 }
  0x43   :  { %v156_v60 = vadd.f32 %v155_v19, %v141_v15  ;;  %v170_v61 = vmul.f32 %v169_v48, %v167_v20  ;;  %v269_v62 = vadd.f32 %v268_v47, %v266_v53  ;;  %v281_v63 = vadd.f32 %v280_v54, %v277_v49 }
  0x44   :  { %v258_v0 = vmul.f32 %v257_v40, %v255_v58  ;;  %v272_v1 = vstv %s688_s4  ;;  %v215_v2 = vadd.f32 %v214_v51, %v200_v42  ;;  %v229_v34 = vmul.f32 %v228_v56, %v226_v52 }
  0x45   :  { %v270_v3 = vmax.f32 %v269_v62, 0.0  ;;  %v284_v4 = vadd.f32 %v283_v59, %v281_v63  ;;  %v287_v6 = vstv %s696_s5  ;;  %v112_v35 = vadd.f32 %v601_v29, %v637_v55 }
  0x46   :  { %v259_v5 = vadd.f32 %v258_v0, %v244_v57  ;;  %v171_v7 = vadd.f32 %v170_v61, %v156_v60  ;;  %v230_v10 = vadd.f32 %v229_v34, %v215_v2 }
  0x47   :  { %v273_v8 = vmul.f32 %v272_v1, %v270_v3  ;;  %v285_v9 = vmax.f32 %v284_v4, 0.0 }
  0x48   :  { %v290_v13 = vadd.f32 %v171_v7, %v112_v35 }
  0x49   :  { %v274_v11 = vadd.f32 %v273_v8, %v259_v5  ;;  %v288_v12 = vmul.f32 %v287_v6, %v285_v9 }
  0x4b   :  { %v289_v48 = vadd.f32 %v288_v12, %v274_v11 }
  0x4d   :  { %v291_v14 = vadd.f32 %v289_v48, %v230_v10 }
  0x4f   :  { %v292_v15 = vadd.f32 %v291_v14, %v290_v13 }
  0x51   :  { %293 = vst [vmem:[#allocation4] sm:$0x1] %v292_v15 }
  0x52   :  { %405 = shalt.err (!%p402_p7)
}
  0x53   :  { %s406_s12 = scalar_lea.hbm %s726_s2, 16 }
  0x54   :  { %p407_p8 = scmp.ne.s32.totalorder %s726_s2, %s406_s12  ;;  %p410_p9 = scmp.lt.u32.totalorder %s406_s12, %s726_s2 }
  0x56   :  { %p412_p10 = pnand %p410_p9, %p407_p8 }
  0x58   :  { %415 = shalt.err (!%p412_p10)
}
  0x59   :  { %303 = dma.vmem_to_hbm [thread:$0]  %s301_s7, 16, %s726_s2, [#allocation5]  }
  0x5a   :  { %418 = dma.done.wait [#allocation5], 16  }
  0x5b   :  { %419 = vsyncadd [#allocation5], 4294967280 }
  0x5c   :  { %307 = vsyncpa [#allocation5], 1 }

</bundles_post_ra>
